<compile_context>
chip_gen: v6e
topology: v6e:2x2x1
jax: 0.10.0
libtpu: 0.0.40
codegen_flags: <defaults>
</compile_context>

<pallas_src>
import math
from dataclasses import dataclass
from typing import Optional

import jax
import jax.numpy as jnp
from jax.experimental import pallas as pl
from jax.experimental.pallas import tpu as pltpu


# --------------------------------------------------------------------------------------
# Config (mirrors ModelArgs; shrunk to small synthetic sizes)
# --------------------------------------------------------------------------------------
@dataclass
class Config:
    dim: int = 32
    n_layers: int = 2
    n_heads: int = 4
    vocab_size: int = 64
    multiple_of: int = 16
    ffn_dim_multiplier: Optional[float] = None
    norm_eps: float = 1e-5
    max_seq_len: int = 16
    routing: bool = True
    aux_routing: bool = False
    capacity: int = 16 // 8          # max_seq_len // 8, like ModelArgs
    router_skip_blocks: int = 2


def ffn_hidden_dim(dim, multiple_of, ffn_dim_multiplier):
    hidden = 4 * dim
    hidden = int(2 * hidden / 3)
    if ffn_dim_multiplier is not None:
        hidden = int(ffn_dim_multiplier * hidden)
    return multiple_of * ((hidden + multiple_of - 1) // multiple_of)


def _round_up(x, m):
    return ((x + m - 1) // m) * m


def _cparams(dims, vmem_mb):
    return pltpu.CompilerParams(dimension_semantics=dims,
                                vmem_limit_bytes=vmem_mb * 1024 * 1024)


# --------------------------------------------------------------------------------------
# Kernel 1: fused RMSNorm + (multi-)matmul (+ residual)
# --------------------------------------------------------------------------------------
def fused_norm_matmul(x, norm_w, ws, n_actual, *, eps=1e-5, residual=None,
                      out_dtype=jnp.float32, tm_pref=256, tn_pref=256):
    """outs[t] = (RMSNorm(x)*norm_w if norm_w is not None else x) @ ws[t] [+ residual].

    x:        (M, K) f32 or bf16 (unpadded activations).
    norm_w:   (1, Kp) f32 PRE-padded, or None.
    ws:       list of PRE-padded bf16 weights, all (Kp, Np), Kp/Np multiples of 128.
    residual: (M, n_actual) f32, only when len(ws) == 1.
    Grid = (M tiles ["parallel"], N tiles ["arbitrary"]).  The normalized + bf16-cast
    activation is computed once per M tile (at j==0) into a VMEM scratch and reused
    across all N tiles and all weights.  Returns list of (M, n_actual) out_dtype.
    """
    M, K = x.shape
    Kp, Np = ws[0].shape
    for w in ws:
        assert w.shape == (Kp, Np) and w.dtype == jnp.bfloat16
    T = len(ws)
    has_norm = norm_w is not None
    has_res = residual is not None
    assert not (has_res and T > 1)

    tm = min(tm_pref, _round_up(M, 16))        # 16: bf16 sublane packing
    Mp = _round_up(M, tm)
    tn = math.gcd(Np, tn_pref)                  # lane-dense, divides pre-padded Np
    inv_k = 1.0 / K                             # mean over TRUE feature dim

    xp = jnp.pad(x, ((0, Mp - M), (0, Kp - K)))

    inputs = [xp]
    in_specs = [pl.BlockSpec((tm, Kp), lambda i, j: (i, 0))]
    if has_norm:
        inputs.append(norm_w)
        in_specs.append(pl.BlockSpec((1, Kp), lambda i, j: (0, 0)))
    for w in ws:
        inputs.append(w)
        in_specs.append(pl.BlockSpec((Kp, tn), lambda i, j: (0, j)))
    if has_res:
        rp = jnp.pad(residual.astype(jnp.float32),
                     ((0, Mp - M), (0, Np - residual.shape[1])))
        inputs.append(rp)
        in_specs.append(pl.BlockSpec((tm, tn), lambda i, j: (i, j)))

    def kernel(*refs):
        idx = 0
        x_ref = refs[idx]; idx += 1
        nw_ref = None
        if has_norm:
            nw_ref = refs[idx]; idx += 1
        w_refs = refs[idx:idx + T]; idx += T
        r_ref = None
        if has_res:
            r_ref = refs[idx]; idx += 1
        o_refs = refs[idx:idx + T]; idx += T
        xn_sc = refs[idx]

        @pl.when(pl.program_id(1) == 0)        # once per M tile: norm + bf16 cast
        def _():
            xv = x_ref[...].astype(jnp.float32)
            if has_norm:
                ms = jnp.sum(xv * xv, axis=-1, keepdims=True) * inv_k
                xv = xv * jax.lax.rsqrt(ms + eps) * nw_ref[...]
            xn_sc[...] = xv.astype(jnp.bfloat16)

        xn = xn_sc[...]
        for t in range(T):
            acc = jnp.dot(xn, w_refs[t][...], preferred_element_type=jnp.float32)
            if has_res:
                acc = acc + r_ref[...]
            o_refs[t][...] = acc.astype(out_dtype)

    outs = pl.pallas_call(
        kernel,
        out_shape=[jax.ShapeDtypeStruct((Mp, Np), out_dtype) for _ in ws],
        grid=(Mp // tm, Np // tn),
        in_specs=in_specs,
        out_specs=[pl.BlockSpec((tm, tn), lambda i, j: (i, j)) for _ in ws],
        scratch_shapes=[pltpu.VMEM((tm, Kp), jnp.bfloat16)],
        compiler_params=_cparams(("parallel", "arbitrary"), 64),
    )(*inputs)
    if not isinstance(outs, (list, tuple)):
        outs = [outs]
    return [o[:M, :n_actual] for o in outs]


# --------------------------------------------------------------------------------------
# Kernel 2: fused FFN block  out = h + scale * w2(silu(w1 n) * w3 n),  n = RMSNorm(h)
# --------------------------------------------------------------------------------------
def fused_ffn_block(h, norm_w, w1, w3, w2, scale, *, eps, tm_pref=256, th_pref=256):
    """h: (M, D) f32;  norm_w: (1, Dp) f32 pre-padded;  w1/w3: (Dp, Hp) bf16 pre-padded,
    w2: (Hp, Dp) bf16 pre-padded;  scale: (M, 1) f32 (router weight).  Grid = (M tiles
    ["parallel"], H tiles ["arbitrary"]).  The normalized activation is cached in VMEM
    (bf16) at j==0; the reduction over H accumulates directly into the resident f32
    output block; residual add + router scaling are the finalize epilogue."""
    M, D = h.shape
    Dp, Hp = w1.shape
    tm = min(tm_pref, _round_up(M, 16))
    Mp = _round_up(M, tm)
    th = math.gcd(Hp, th_pref)
    nh = Hp // th
    inv_d = 1.0 / D

    hp = jnp.pad(h.astype(jnp.float32), ((0, Mp - M), (0, Dp - D)))
    sp = jnp.pad(scale.astype(jnp.float32), ((0, Mp - M), (0, 0)))

    def kernel(h_ref, nw_ref, w1_ref, w3_ref, w2_ref, s_ref, o_ref, xn_sc):
        j = pl.program_id(1)

        @pl.when(j == 0)
        def _():
            xv = h_ref[...]
            ms = jnp.sum(xv * xv, axis=-1, keepdims=True) * inv_d
            xn_sc[...] = (xv * jax.lax.rsqrt(ms + eps)
                          * nw_ref[...]).astype(jnp.bfloat16)
            o_ref[...] = jnp.zeros_like(o_ref)

        xn = xn_sc[...]                                        # (tm, Dp) bf16
        a = jnp.dot(xn, w1_ref[...], preferred_element_type=jnp.float32)
        b = jnp.dot(xn, w3_ref[...], preferred_element_type=jnp.float32)
        # exact sigmoid: exp(-a)->inf for very negative a gives 1/inf == 0 (no NaN).
        g = a * (1.0 / (1.0 + jnp.exp(-a))) * b
        o_ref[...] += jnp.dot(g.astype(jnp.bfloat16), w2_ref[...],
                              preferred_element_type=jnp.float32)

        @pl.when(j == nh - 1)
        def _():
            o_ref[...] = h_ref[...] + s_ref[...] * o_ref[...]

    out = pl.pallas_call(
        kernel,
        out_shape=jax.ShapeDtypeStruct((Mp, Dp), jnp.float32),
        grid=(Mp // tm, nh),
        in_specs=[
            pl.BlockSpec((tm, Dp), lambda i, j: (i, 0)),   # h (residual + norm input)
            pl.BlockSpec((1, Dp), lambda i, j: (0, 0)),    # ffn_norm weight
            pl.BlockSpec((Dp, th), lambda i, j: (0, j)),   # w1 tile
            pl.BlockSpec((Dp, th), lambda i, j: (0, j)),   # w3 tile
            pl.BlockSpec((th, Dp), lambda i, j: (j, 0)),   # w2 tile
            pl.BlockSpec((tm, 1), lambda i, j: (i, 0)),    # per-row router weight
        ],
        out_specs=pl.BlockSpec((tm, Dp), lambda i, j: (i, 0)),   # resident accumulator
        scratch_shapes=[pltpu.VMEM((tm, Dp), jnp.bfloat16)],
        compiler_params=_cparams(("parallel", "arbitrary"), 64),
    )(hp, norm_w, w1, w3, w2, sp)
    return out[:M, :D]


# --------------------------------------------------------------------------------------
# Kernel 3: flash-style causal attention core
# --------------------------------------------------------------------------------------
def flash_attention(q, k, v, *, t_pref=128):
    """q, k, v: (B, nH, S, hd) bf16 -> (B, nH, S, hd) bf16.

    Grid = (B, nH, q-tile [all "parallel"], kv-tile ["arbitrary"]).  Online softmax
    with m/l/acc VMEM scratch; causal + pad masking built from iota; kv tiles that
    are entirely above the causal diagonal or entirely padding are skipped.
    """
    B, nH, S, hd = q.shape
    t = min(t_pref, _round_up(S, 8))
    Sp = _round_up(S, t)
    if Sp != S:
        pad = ((0, 0), (0, 0), (0, Sp - S), (0, 0))
        q = jnp.pad(q, pad); k = jnp.pad(k, pad); v = jnp.pad(v, pad)
    nq = Sp // t
    nkv = Sp // t
    scale = 1.0 / math.sqrt(hd)
    NEG = -1e30          # safe: scores stay f32 inside the kernel

    def kernel(q_ref, k_ref, v_ref, o_ref, m_sc, l_sc, acc_sc):
        qi = pl.program_id(2)
        kv = pl.program_id(3)

        @pl.when(kv == 0)
        def _():
            m_sc[...] = jnp.full(m_sc.shape, -jnp.inf, jnp.float32)
            l_sc[...] = jnp.zeros_like(l_sc)
            acc_sc[...] = jnp.zeros_like(acc_sc)

        q_start = qi * t
        k_start = kv * t
        # Skip kv tiles fully above the causal diagonal or fully in the pad region.
        @pl.when(jnp.logical_and(k_start <= q_start + (t - 1), k_start < S))
        def _():
            qv = q_ref[0, 0]                                    # (t, hd) bf16
            kvv = k_ref[0, 0]
            vv = v_ref[0, 0]
            s = jax.lax.dot_general(qv, kvv, (((1,), (1,)), ((), ())),
                                    preferred_element_type=jnp.float32) * scale
            rows = q_start + jax.lax.broadcasted_iota(jnp.int32, (t, t), 0)
            cols = k_start + jax.lax.broadcasted_iota(jnp.int32, (t, t), 1)
            valid = jnp.logical_and(cols <= rows, cols < S)     # causal + length mask
            s = jnp.where(valid, s, NEG)
            m_prev = m_sc[...]
            m_new = jnp.maximum(m_prev, jnp.max(s, axis=-1, keepdims=True))
            alpha = jnp.exp(m_prev - m_new)
            p = jnp.exp(s - m_new)
            l_sc[...] = alpha * l_sc[...] + jnp.sum(p, axis=-1, keepdims=True)
            acc_sc[...] = alpha * acc_sc[...] + jnp.dot(
                p.astype(jnp.bfloat16), vv, preferred_element_type=jnp.float32)
            m_sc[...] = m_new

        @pl.when(kv == nkv - 1)
        def _():
            o_ref[0, 0] = (acc_sc[...]
                           * pl.reciprocal(l_sc[...], approx=True)).astype(o_ref.dtype)

    out = pl.pallas_call(
        kernel,
        out_shape=jax.ShapeDtypeStruct((B, nH, Sp, hd), jnp.bfloat16),
        grid=(B, nH, nq, nkv),
        in_specs=[pl.BlockSpec((1, 1, t, hd), lambda b, h, i, j: (b, h, i, 0)),
                  pl.BlockSpec((1, 1, t, hd), lambda b, h, i, j: (b, h, j, 0)),
                  pl.BlockSpec((1, 1, t, hd), lambda b, h, i, j: (b, h, j, 0))],
        out_specs=pl.BlockSpec((1, 1, t, hd), lambda b, h, i, j: (b, h, i, 0)),
        scratch_shapes=[pltpu.VMEM((t, 1), jnp.float32),
                        pltpu.VMEM((t, 1), jnp.float32),
                        pltpu.VMEM((t, hd), jnp.float32)],
        compiler_params=_cparams(("parallel", "parallel", "parallel", "arbitrary"), 32),
    )(q, k, v)
    return out[:, :, :S, :]


# --------------------------------------------------------------------------------------
# JAX glue: RoPE, attention module, MoD block, full model
# --------------------------------------------------------------------------------------
def precompute_freqs(head_dim, end, theta=10000.0):
    freqs = 1.0 / (theta ** (jnp.arange(0, head_dim, 2)[: head_dim // 2]
                             .astype(jnp.float32) / head_dim))
    t = jnp.arange(end, dtype=jnp.float32)
    angles = jnp.outer(t, freqs)                   # (end, head_dim/2)
    return jnp.cos(angles), jnp.sin(angles)


def apply_rotary(x, cos, sin):
    # x: (B, S, H, D); cos/sin: (S, D/2). (x0,x1),(x2,x3),... are the complex pairs.
    # TODO(synk): fuse RoPE into the QKV epilogue / attention prologue to avoid this
    # XLA relayout pass (needs a lane-pair swizzle that is safe under Mosaic).
    xf = x.astype(jnp.float32)
    xr = xf[..., 0::2]
    xi = xf[..., 1::2]
    c = cos[None, :, None, :]
    s = sin[None, :, None, :]
    orr = xr * c - xi * s
    oii = xr * s + xi * c
    return jnp.stack([orr, oii], axis=-1).reshape(x.shape)


def attention_fwd(x, cos, sin, p, cfg):
    """Returns x + Attention(RMSNorm(x)); norm + QKV + residual fused in Pallas."""
    B, S, D = x.shape
    nH = cfg.n_heads
    hd = D // nH
    M = B * S
    x2d = x.reshape(M, D)

    # attention_norm + fused QKV projection -> three separate bf16 outputs.
    q2d, k2d, v2d = fused_norm_matmul(x2d, p["attn_norm"], [p["wq"], p["wk"], p["wv"]],
                                      D, eps=cfg.norm_eps, out_dtype=jnp.bfloat16)

    q = apply_rotary(q2d.reshape(B, S, nH, hd), cos, sin)
    k = apply_rotary(k2d.reshape(B, S, nH, hd), cos, sin)
    v = v2d.reshape(B, S, nH, hd)
    # n_kv_heads == n_heads -> repeat_kv is the identity.

    q = q.transpose(0, 2, 1, 3).astype(jnp.bfloat16)       # (B, nH, S, hd)
    k = k.transpose(0, 2, 1, 3).astype(jnp.bfloat16)
    v = v.transpose(0, 2, 1, 3).astype(jnp.bfloat16)

    o = flash_attention(q, k, v)                            # (B, nH, S, hd) bf16
    o2d = o.transpose(0, 2, 1, 3).reshape(M, D)

    # wo projection with the residual (x) fused into the same kernel.
    h2d = fused_norm_matmul(o2d, None, [p["wo"]], D, residual=x2d,
                            out_dtype=jnp.float32)[0]
    return h2d.reshape(B, S, D)


def mod_block(x, p, router_w, cfg, layer_id, cos, sin):
    B, S, D = x.shape
    use_routing = (layer_id % cfg.router_skip_blocks != 0) and cfg.routing

    sorted_idx = sorted_w = y = None
    if use_routing:
        # Router (dim -> 1) stays in plain JAX: an N=1 Pallas output block would be
        # >99% lane padding / masked stores.
        tw = jnp.squeeze(x @ router_w, axis=-1)             # (B, S)
        sig = jax.nn.sigmoid(tw)
        kcap = min(S, cfg.capacity)
        topk_vals, topk_idx = jax.lax.top_k(sig, kcap)
        order = jnp.argsort(topk_idx, axis=1)
        sorted_idx = jnp.take_along_axis(topk_idx, order, axis=1)
        sorted_w = jnp.take_along_axis(topk_vals, order, axis=1)
        y = x
        gather_idx = jnp.broadcast_to(sorted_idx[:, :, None], (B, kcap, D))
        x = jnp.take_along_axis(x, gather_idx, axis=1)
        S = kcap
        cos = cos[:S]                 # matches torch: freqs_cis = freqs_cis[:seq_len]
        sin = sin[:S]

    # h = x + attention(attention_norm(x))   (causal mask generated in-kernel)
    h = attention_fwd(x, cos, sin, p, cfg)

    M = B * S
    if use_routing:
        scale = sorted_w.reshape(M, 1).astype(jnp.float32)
    else:
        scale = jnp.ones((M, 1), jnp.float32)

    # out = h + scale * FFN(ffn_norm(h)),  all in one fused kernel.
    out = fused_ffn_block(h.reshape(M, D), p["ffn_norm"], p["w1"], p["w3"],
                          p["w2"], scale, eps=cfg.norm_eps).reshape(B, S, D)

    if use_routing:
        out = y.at[jnp.arange(B)[:, None], sorted_idx, :].add(out)   # scatter_add
    return out


def mod_transformer_forward(params, cfg, tokens, start_pos):
    # TODO(synk): only the start_pos == 0 / no-KV-cache inference path is implemented,
    # matching the reference module's behaviour without a cache.
    B, S = tokens.shape
    h = jnp.take(params["tok_emb"], tokens, axis=0)
    cos = params["cos"][start_pos:start_pos + S]
    sin = params["sin"][start_pos:start_pos + S]
    for i in range(cfg.n_layers):
        h = mod_block(h, params["layers"][i], params["router"], cfg, i, cos, sin)
    # final RMSNorm fused into the logits projection; larger tn amortizes weight DMA.
    logits = fused_norm_matmul(h.reshape(B * S, cfg.dim), params["norm"],
                               [params["output"]], cfg.vocab_size,
                               eps=cfg.norm_eps, out_dtype=jnp.float32,
                               tn_pref=512)[0]
    return logits.reshape(B, S, cfg.vocab_size)


# --------------------------------------------------------------------------------------
# Deterministic parameter init — matmul weights PRE-padded to 128 multiples and
# PRE-cast to bf16 once (no per-forward weight padding/cast traffic).
# --------------------------------------------------------------------------------------
def init_params(cfg, key):
    hidden = ffn_hidden_dim(cfg.dim, cfg.multiple_of, cfg.ffn_dim_multiplier)
    Dp = _round_up(cfg.dim, 128)
    Hp = _round_up(hidden, 128)
    Vp = _round_up(cfg.vocab_size, 128)
    keys = iter(jax.random.split(key, 8 + 8 * cfg.n_layers))

    def dense(shape):
        return jax.random.normal(next(keys), shape, jnp.float32) * 0.02

    def padded_bf16(w, rows, cols):
        return jnp.pad(w, ((0, rows - w.shape[0]),
                           (0, cols - w.shape[1]))).astype(jnp.bfloat16)

    def padded_norm(d, cols):
        return jnp.pad(jnp.ones((d,), jnp.float32), (0, cols - d)).reshape(1, cols)

    params = {
        "tok_emb": dense((cfg.vocab_size, cfg.dim)),
        "router": dense((cfg.dim, 1)) if cfg.routing else None,
        "norm": padded_norm(cfg.dim, Dp),
        "output": padded_bf16(dense((cfg.dim, cfg.vocab_size)), Dp, Vp),
        "layers": [],
    }
    head_dim = cfg.dim // cfg.n_heads
    params["cos"], params["sin"] = precompute_freqs(head_dim, cfg.max_seq_len * 2)
    for _ in range(cfg.n_layers):
        params["layers"].append({
            "wq": padded_bf16(dense((cfg.dim, cfg.dim)), Dp, Dp),
            "wk": padded_bf16(dense((cfg.dim, cfg.dim)), Dp, Dp),
            "wv": padded_bf16(dense((cfg.dim, cfg.dim)), Dp, Dp),
            "wo": padded_bf16(dense((cfg.dim, cfg.dim)), Dp, Dp),
            "w1": padded_bf16(dense((cfg.dim, hidden)), Dp, Hp),
            "w3": padded_bf16(dense((cfg.dim, hidden)), Dp, Hp),
            "w2": padded_bf16(dense((hidden, cfg.dim)), Hp, Dp),
            "attn_norm": padded_norm(cfg.dim, Dp),
            "ffn_norm": padded_norm(cfg.dim, Dp),
        })
    return params


# TODO(synk): aux_router / training-time auxiliary-loss output collection is not
# exercised (aux_routing=False, eval mode), matching the default inference path.

if __name__ == "__main__":
    cfg = Config()
    key = jax.random.PRNGKey(0)
    pkey, tkey = jax.random.split(key)
    params = init_params(cfg, pkey)

    batch, seq = 2, 8
    tokens = jax.random.randint(tkey, (batch, seq), 0, cfg.vocab_size, dtype=jnp.int32)

    logits = mod_transformer_forward(params, cfg, tokens, start_pos=0)
    logits = jax.block_until_ready(logits)

    assert logits.shape == (batch, seq, cfg.vocab_size)
    assert logits.dtype == jnp.float32
    assert bool(jnp.all(jnp.isfinite(logits)))
    print("KERNEL_OK")
</pallas_src>

<mosaic_0001>
module attributes {stable_mosaic.version = 11 : i64} {
  func.func @kernel(%arg0: i32, %arg1: i32, %arg2: memref<16x128xf32, #tpu.memory_space<vmem>>, %arg3: memref<1x128xf32, #tpu.memory_space<vmem>>, %arg4: memref<128x128xbf16, #tpu.memory_space<vmem>>, %arg5: memref<128x128xbf16, #tpu.memory_space<vmem>>, %arg6: memref<128x128xbf16, #tpu.memory_space<vmem>>, %arg7: memref<16x128xbf16, #tpu.memory_space<vmem>>, %arg8: memref<16x128xbf16, #tpu.memory_space<vmem>>, %arg9: memref<16x128xbf16, #tpu.memory_space<vmem>>, %arg10: memref<16x128xbf16, #tpu.memory_space<vmem>>) attributes {dimension_semantics = [#tpu.dimension_semantics<parallel>, #tpu.dimension_semantics<arbitrary>], iteration_bounds = array<i64: 1, 1>, scalar_prefetch = 0 : i64, scratch_operands = 1 : i64, tpu.core_type = #tpu.core_type<tc>, window_params = [{transform_indices = @transform_0, window_bounds = array<i64: 16, 128>}, {pipeline_mode = #tpu.pipeline_mode<synchronous>, transform_indices = @transform_1, window_bounds = array<i64: 1, 128>}, {transform_indices = @transform_2, window_bounds = array<i64: 128, 128>}, {transform_indices = @transform_3, window_bounds = array<i64: 128, 128>}, {transform_indices = @transform_4, window_bounds = array<i64: 128, 128>}, {transform_indices = @transform_5, window_bounds = array<i64: 16, 128>}, {transform_indices = @transform_6, window_bounds = array<i64: 16, 128>}, {transform_indices = @transform_7, window_bounds = array<i64: 16, 128>}]} {
    %c0_i32 = arith.constant 0 : i32
    %0 = arith.cmpi eq, %arg1, %c0_i32 : i32
    %1 = arith.extui %0 : i1 to i32
    %c0_i32_0 = arith.constant 0 : i32
    %2 = arith.cmpi ne, %1, %c0_i32_0 : i32
    scf.if %2 {
      %c0_16 = arith.constant 0 : index
      %c0_17 = arith.constant 0 : index
      %16 = vector.load %arg2[%c0_16, %c0_17] : memref<16x128xf32, #tpu.memory_space<vmem>>, vector<16x128xf32>
      %17 = arith.mulf %16, %16 : vector<16x128xf32>
      %cst_18 = arith.constant dense<0.000000e+00> : vector<16xf32>
      %18 = vector.multi_reduction <add>, %17, %cst_18 [1] : vector<16x128xf32> to vector<16xf32>
      %19 = vector.shape_cast %18 : vector<16xf32> to vector<16x1xf32>
      %cst_19 = arith.constant 3.125000e-02 : f32
      %20 = vector.broadcast %cst_19 : f32 to vector<16x1xf32>
      %21 = arith.mulf %19, %20 : vector<16x1xf32>
      %cst_20 = arith.constant 9.99999974E-6 : f32
      %22 = vector.broadcast %cst_20 : f32 to vector<16x1xf32>
      %23 = arith.addf %21, %22 : vector<16x1xf32>
      %24 = math.rsqrt %23 : vector<16x1xf32>
      %25 = vector.broadcast %24 : vector<16x1xf32> to vector<16x128xf32>
      %26 = arith.mulf %16, %25 : vector<16x128xf32>
      %c0_21 = arith.constant 0 : index
      %c0_22 = arith.constant 0 : index
      %27 = vector.load %arg3[%c0_21, %c0_22] : memref<1x128xf32, #tpu.memory_space<vmem>>, vector<1x128xf32>
      %28 = vector.broadcast %27 : vector<1x128xf32> to vector<16x128xf32>
      %29 = arith.mulf %26, %28 : vector<16x128xf32>
      %30 = arith.truncf %29 : vector<16x128xf32> to vector<16x128xbf16>
      %c0_23 = arith.constant 0 : index
      %c0_24 = arith.constant 0 : index
      %31 = vector.load %arg10[%c0_23, %c0_24] : memref<16x128xbf16, #tpu.memory_space<vmem>>, vector<16x128xbf16>
      tpu.vector_store %arg10[%c0_23, %c0_24], %30 {strides = array<i32>} : memref<16x128xbf16, #tpu.memory_space<vmem>>, vector<16x128xbf16>,
    } else {
    }
    %c0 = arith.constant 0 : index
    %c0_1 = arith.constant 0 : index
    %3 = vector.load %arg10[%c0, %c0_1] : memref<16x128xbf16, #tpu.memory_space<vmem>>, vector<16x128xbf16>
    %c0_2 = arith.constant 0 : index
    %c0_3 = arith.constant 0 : index
    %4 = vector.load %arg4[%c0_2, %c0_3] : memref<128x128xbf16, #tpu.memory_space<vmem>>, vector<128x128xbf16>
    %cst = arith.constant dense<0.000000e+00> : vector<16x128xf32>
    %5 = tpu.matmul %3, %4, %cst {dimension_numbers = #tpu.dot_dimension_numbers<[1], [0], [0], [1], [0, 0, 1, 1], [], []>} : vector<16x128xbf16>, vector<128x128xbf16>, vector<16x128xf32> -> vector<16x128xf32>
    %6 = arith.truncf %5 : vector<16x128xf32> to vector<16x128xbf16>
    %c0_4 = arith.constant 0 : index
    %c0_5 = arith.constant 0 : index
    %7 = vector.load %arg7[%c0_4, %c0_5] : memref<16x128xbf16, #tpu.memory_space<vmem>>, vector<16x128xbf16>
    tpu.vector_store %arg7[%c0_4, %c0_5], %6 {strides = array<i32>} : memref<16x128xbf16, #tpu.memory_space<vmem>>, vector<16x128xbf16>,
    %c0_6 = arith.constant 0 : index
    %c0_7 = arith.constant 0 : index
    %8 = vector.load %arg5[%c0_6, %c0_7] : memref<128x128xbf16, #tpu.memory_space<vmem>>, vector<128x128xbf16>
    %cst_8 = arith.constant dense<0.000000e+00> : vector<16x128xf32>
    %9 = tpu.matmul %3, %8, %cst_8 {dimension_numbers = #tpu.dot_dimension_numbers<[1], [0], [0], [1], [0, 0, 1, 1], [], []>} : vector<16x128xbf16>, vector<128x128xbf16>, vector<16x128xf32> -> vector<16x128xf32>
    %10 = arith.truncf %9 : vector<16x128xf32> to vector<16x128xbf16>
    %c0_9 = arith.constant 0 : index
    %c0_10 = arith.constant 0 : index
    %11 = vector.load %arg8[%c0_9, %c0_10] : memref<16x128xbf16, #tpu.memory_space<vmem>>, vector<16x128xbf16>
    tpu.vector_store %arg8[%c0_9, %c0_10], %10 {strides = array<i32>} : memref<16x128xbf16, #tpu.memory_space<vmem>>, vector<16x128xbf16>,
    %c0_11 = arith.constant 0 : index
    %c0_12 = arith.constant 0 : index
    %12 = vector.load %arg6[%c0_11, %c0_12] : memref<128x128xbf16, #tpu.memory_space<vmem>>, vector<128x128xbf16>
    %cst_13 = arith.constant dense<0.000000e+00> : vector<16x128xf32>
    %13 = tpu.matmul %3, %12, %cst_13 {dimension_numbers = #tpu.dot_dimension_numbers<[1], [0], [0], [1], [0, 0, 1, 1], [], []>} : vector<16x128xbf16>, vector<128x128xbf16>, vector<16x128xf32> -> vector<16x128xf32>
    %14 = arith.truncf %13 : vector<16x128xf32> to vector<16x128xbf16>
    %c0_14 = arith.constant 0 : index
    %c0_15 = arith.constant 0 : index
    %15 = vector.load %arg9[%c0_14, %c0_15] : memref<16x128xbf16, #tpu.memory_space<vmem>>, vector<16x128xbf16>
    tpu.vector_store %arg9[%c0_14, %c0_15], %14 {strides = array<i32>} : memref<16x128xbf16, #tpu.memory_space<vmem>>, vector<16x128xbf16>,
    return
  }
  func.func @transform_0(%arg0: i32, %arg1: i32) -> (i32, i32) {
    %c0_i32 = arith.constant 0 : i32
    %c0_i32_0 = arith.constant 0 : i32
    return %arg0, %c0_i32 : i32, i32
  }
  func.func @transform_1(%arg0: i32, %arg1: i32) -> (i32, i32) {
    %c0_i32 = arith.constant 0 : i32
    %c0_i32_0 = arith.constant 0 : i32
    %c0_i32_1 = arith.constant 0 : i32
    return %c0_i32, %c0_i32_0 : i32, i32
  }
  func.func @transform_2(%arg0: i32, %arg1: i32) -> (i32, i32) {
    %c0_i32 = arith.constant 0 : i32
    %c0_i32_0 = arith.constant 0 : i32
    return %c0_i32, %arg1 : i32, i32
  }
  func.func @transform_3(%arg0: i32, %arg1: i32) -> (i32, i32) {
    %c0_i32 = arith.constant 0 : i32
    %c0_i32_0 = arith.constant 0 : i32
    return %c0_i32, %arg1 : i32, i32
  }
  func.func @transform_4(%arg0: i32, %arg1: i32) -> (i32, i32) {
    %c0_i32 = arith.constant 0 : i32
    %c0_i32_0 = arith.constant 0 : i32
    return %c0_i32, %arg1 : i32, i32
  }
  func.func @transform_5(%arg0: i32, %arg1: i32) -> (i32, i32) {
    %c0_i32 = arith.constant 0 : i32
    return %arg0, %arg1 : i32, i32
  }
  func.func @transform_6(%arg0: i32, %arg1: i32) -> (i32, i32) {
    %c0_i32 = arith.constant 0 : i32
    return %arg0, %arg1 : i32, i32
  }
  func.func @transform_7(%arg0: i32, %arg1: i32) -> (i32, i32) {
    %c0_i32 = arith.constant 0 : i32
    return %arg0, %arg1 : i32, i32
  }
}

</mosaic_0001>

<bundles_post_ra>
// kernel: tpu_custom_call.1
= control target key start
LH: loop header
LB: loop body
LE: loop exit
PB: predicated region body
PF: predicated region fallthrough
CT: control target
= control target key end

     0   :  { %13 = vsyncpa [#allocation4], 0  ;;  %s999_s0 = inlined_call_operand.hbm [shape: f32[16,128], index: 0, kind: input, shape index: {}]   ;;  %s1000_s1 = inlined_call_operand.vmem [shape: f32[1,128], index: 1, kind: input, shape index: {}]   ;;  %s1001_s2 = inlined_call_operand.hbm [shape: bf16[128,128], index: 2, kind: input, shape index: {}]   ;;  %s1002_s3 = inlined_call_operand.hbm [shape: bf16[128,128], index: 3, kind: input, shape index: {}]   ;;  %s1003_s4 = inlined_call_operand.hbm [shape: bf16[128,128], index: 4, kind: input, shape index: {}]   ;;  %s1004_s5 = inlined_call_operand.hbm [shape: bf16[16,128], index: 5, kind: output, shape index: {0}]   ;;  %s1005_s6 = inlined_call_operand.hbm [shape: bf16[16,128], index: 6, kind: output, shape index: {1}]   ;;  %s1006_s7 = inlined_call_operand.hbm [shape: bf16[16,128], index: 7, kind: output, shape index: {2}]  }
   0x1   :  { %14 = vsyncpa [#allocation7], 0 }
   0x2   :  { %15 = vsyncpa [#allocation10], 0 }
   0x3   :  { %16 = vsyncpa [#allocation5], 0 }
   0x4   :  { %17 = vsyncpa [#allocation13], 0  ;;  %s864_s24 = smov [#allocation6]  }
   0x5   :  { %s37_s25 = sshll.u32 %s864_s24, 4  ;;  %s38_s25 = int_to_ptr.vmem [resolvable:$true] %s37_s25 }
   0x6   :  { %s722_s26 = scalar_lea.vmem %s38_s25, 1024  ;;  %p727_p1 = scmp.lt.s32.totalorder %s38_s25, %s38_s25 }
   0x7   :  { %p723_p0 = scmp.ne.s32.totalorder %s38_s25, %s722_s26  ;;  %p728_p2 = scmp.lt.s32.totalorder %s722_s26, %s722_s26 }
   0x9   :  { %p729_p3 = por %p728_p2, %p727_p1 }
   0xb   :  { %p730_p4 = pnand %p729_p3, %p723_p0 }
   0xd   :  { %733 = shalt.err (!%p730_p4)
}
   0xe   :  { %s865_s27 = smov 64   ;;  %s866_s28 = smov 4  }
   0xf   :  { %43 = dma.hbm_to_vmem [thread:$0]  %s1001_s2, 1024, %s38_s25, [#allocation7], %s865_s27, %s865_s27, %s866_s28  }
  0x10   :  { %s867_s8 = smov [#allocation3]  }
  0x11   :  { %s23_s9 = sshll.u32 %s867_s8, 4  ;;  %s24_s9 = int_to_ptr.vmem [resolvable:$true] %s23_s9 }
  0x12   :  { %s742_s10 = scalar_lea.vmem %s24_s9, 256  ;;  %p747_p6 = scmp.lt.s32.totalorder %s24_s9, %s24_s9 }
  0x13   :  { %p743_p5 = scmp.ne.s32.totalorder %s24_s9, %s742_s10  ;;  %p748_p7 = scmp.lt.s32.totalorder %s742_s10, %s742_s10 }
  0x15   :  { %p749_p8 = por %p748_p7, %p747_p6 }
  0x17   :  { %p750_p9 = pnand %p749_p8, %p743_p5 }
  0x19   :  { %753 = shalt.err (!%p750_p9)
}
  0x1a   :  { %s868_s11 = smov 128   ;;  %s869_s12 = smov 8  }
  0x1b   :  { %29 = dma.hbm_to_vmem [thread:$0]  %s999_s0, 256, %s24_s9, [#allocation4], %s868_s11, %s868_s11, %s869_s12  }
  0x1c   :  { %s870_s15 = smov [#allocation8]   ;;  %s871_s17 = smov [#allocation9]  }
  0x1d   :  { %s49_s16 = sshll.u32 %s870_s15, 4  ;;  %s61_s2 = sshll.u32 %s871_s17, 4  ;;  %s50_s16 = int_to_ptr.vmem [resolvable:$true] %s49_s16  ;;  %s62_s2 = int_to_ptr.vmem [resolvable:$true] %s61_s2 }
  0x1e   :  { %s762_s18 = scalar_lea.vmem %s50_s16, 1024  ;;  %p767_p11 = scmp.lt.s32.totalorder %s50_s16, %s50_s16 }
  0x1f   :  { %p763_p10 = scmp.ne.s32.totalorder %s50_s16, %s762_s18  ;;  %p768_p12 = scmp.lt.s32.totalorder %s762_s18, %s762_s18 }
  0x21   :  { %p769_p13 = por %p768_p12, %p767_p11 }
  0x23   :  { %p770_p0 = pnand %p769_p13, %p763_p10 }
  0x25   :  { %773 = shalt.err (!%p770_p0)
}
  0x26   :  { %55 = dma.hbm_to_vmem [thread:$0]  %s1002_s3, 1024, %s50_s16, [#allocation7], %s865_s27, %s865_s27, %s866_s28  }
  0x27   :  { %s782_s0 = scalar_lea.vmem %s62_s2, 1024  ;;  %p787_p2 = scmp.lt.s32.totalorder %s62_s2, %s62_s2 }
  0x28   :  { %p783_p1 = scmp.ne.s32.totalorder %s62_s2, %s782_s0  ;;  %p788_p3 = scmp.lt.s32.totalorder %s782_s0, %s782_s0 }
  0x2a   :  { %p789_p4 = por %p788_p3, %p787_p2 }
  0x2c   :  { %p790_p5 = pnand %p789_p4, %p783_p1 }
  0x2e   :  { %793 = shalt.err (!%p790_p5)
}
  0x2f   :  { %67 = dma.hbm_to_vmem [thread:$0]  %s1003_s4, 1024, %s62_s2, [#allocation10], %s865_s27, %s865_s27, %s866_s28  }
  0x30   :  { %854 = dma.done.wait [#allocation4], 256  }
  0x31   :  { %855 = vsyncadd [#allocation4], 4294967040 }
  0x32   :  { %856 = dma.done.wait [#allocation7], 2048  }
  0x33   :  { %857 = vsyncadd [#allocation7], 4294965248 }
  0x34   :  { %858 = dma.done.wait [#allocation10], 1024  }
  0x35   :  { %859 = vsyncadd [#allocation10], 4294966272  ;;  %v938_v0 = vld [vmem:[#allocation3] sm:$0xff]  ;;  %v940_v1 = vld [vmem:[#allocation3 + $0x8] sm:$0xff]  ;;  %v872_v5 = vmov 0.0   ;;  %vm873_vm0 = vmmov 0  }
  0x36   :  { %v87_v2 = vmul.f32 %v938_v0, %v938_v0  ;;  %v88_v3 = vmul.f32 %v940_v1, %v940_v1  ;;  %v685_v4 = vld [vmem:[#allocation6 + $0x38] sm:$0xff]   ;;  %612 = vmatprep.subr.bf16.mxu0 %v872_v5  ;;  %632 = vmatprep.subr.bf16.mxu1 %v872_v5  ;;  %v687_v7 = vld [vmem:[#allocation6 + $0x30] sm:$0xff]   ;;  %v689_v9 = vld [vmem:[#allocation6 + $0x28] sm:$0xff]   ;;  %s875_s24 = smov [#allocation11]  }
  0x37   :  { %v686_v6 = vld [vmem:[#allocation8 + $0x38] sm:$0xff]   ;;  %613 = vmatpush3.bf16.msra.mxu0 %v685_v4  ;;  %v688_v8 = vld [vmem:[#allocation8 + $0x30] sm:$0xff]   ;;  %v690_v10 = vld [vmem:[#allocation8 + $0x28] sm:$0xff]   ;;  %628 = vmatprep.mubr.msk.bf16.mxu0 %vm873_vm0, %v872_v5  ;;  %s478_s25 = sshll.u32 %s875_s24, 4  ;;  %s479_s25 = int_to_ptr.vmem [resolvable:$true] %s478_s25 }
  0x38   :  { %89 = vadd.xlane.f32.xlu0 %v87_v2  ;;  %633 = vmatpush3.bf16.msra.mxu1 %v686_v6  ;;  %v691_v11 = vld [vmem:[#allocation6 + $0x20] sm:$0xff]   ;;  %v693_v13 = vld [vmem:[#allocation6 + $0x18] sm:$0xff]   ;;  %v695_v15 = vld [vmem:[#allocation6 + $0x10] sm:$0xff]  }
  0x39   :  { %614 = vmatprep.subr.bf16.mxu0 %v872_v5  ;;  %634 = vmatprep.subr.bf16.mxu1 %v872_v5  ;;  %v692_v12 = vld [vmem:[#allocation8 + $0x20] sm:$0xff]   ;;  %v694_v14 = vld [vmem:[#allocation8 + $0x18] sm:$0xff]   ;;  %v696_v16 = vld [vmem:[#allocation8 + $0x10] sm:$0xff]  }
  0x3a   :  { %v697_v17 = vld [vmem:[#allocation6 + $0x8] sm:$0xff]   ;;  %v699_v19 = vld [vmem:[#allocation6] sm:$0xff]   ;;  %648 = vmatprep.mubr.msk.bf16.mxu1 %vm873_vm0, %v872_v5  ;;  %v702_v35 = vld [vmem:[#allocation9 + $0x38] sm:$0xff]  }
  0x3b   :  { %615 = vmatpush3.bf16.msra.mxu0 %v687_v7  ;;  %v698_v18 = vld [vmem:[#allocation8 + $0x8] sm:$0xff]   ;;  %v700_v20 = vld [vmem:[#allocation8] sm:$0xff]   ;;  %v703_v37 = vld [vmem:[#allocation9 + $0x30] sm:$0xff]  }
  0x3c   :  { %91 = vadd.xlane.f32.xlu0 %v88_v3  ;;  %635 = vmatpush3.bf16.msra.mxu1 %v688_v8  ;;  %v523_v30 = vld [vmem:[%s1000_s1] ss:$0 sm:$0xff]  ;;  %v705_v39 = vld [vmem:[#allocation9 + $0x20] sm:$0xff]   ;;  %v706_v40 = vld [vmem:[#allocation9 + $0x18] sm:$0xff]   ;;  %s874_s1 = smov [#allocation12]  }
  0x3d   :  { %616 = vmatprep.subr.bf16.mxu0 %v872_v5  ;;  %636 = vmatprep.subr.bf16.mxu1 %v872_v5  ;;  %v704_v38 = vld [vmem:[#allocation9 + $0x28] sm:$0xff]   ;;  %v707_v41 = vld [vmem:[#allocation9 + $0x10] sm:$0xff]   ;;  %v709_v43 = vld [vmem:[#allocation9] sm:$0xff]   ;;  %s490_s23 = sshll.u32 %s874_s1, 4  ;;  %s491_s23 = int_to_ptr.vmem [resolvable:$true] %s490_s23 }
  0x3e   :  { %v708_v42 = vld [vmem:[#allocation9 + $0x8] sm:$0xff]   ;;  %s794_s26 = scalar_lea.vmem %s491_s23, 128  ;;  %p799_p7 = scmp.lt.s32.totalorder %s491_s23, %s491_s23 }
  0x3f   :  { %617 = vmatpush3.bf16.msra.mxu0 %v689_v9  ;;  %p795_p6 = scmp.ne.s32.totalorder %s491_s23, %s794_s26  ;;  %p800_p8 = scmp.lt.s32.totalorder %s794_s26, %s794_s26 }
  0x40   :  { %637 = vmatpush3.bf16.msra.mxu1 %v690_v10  ;;  %618 = vmatprep.subr.bf16.mxu0 %v872_v5 }
  0x41   :  { %638 = vmatprep.subr.bf16.mxu1 %v872_v5  ;;  %p801_p9 = por %p800_p8, %p799_p7 }
  0x43   :  { %619 = vmatpush3.bf16.msra.mxu0 %v691_v11  ;;  %p802_p10 = pnand %p801_p9, %p795_p6 }
  0x44   :  { %639 = vmatpush3.bf16.msra.mxu1 %v692_v12  ;;  %620 = vmatprep.subr.bf16.mxu0 %v872_v5 }
  0x45   :  { %640 = vmatprep.subr.bf16.mxu1 %v872_v5 }
  0x47   :  { %621 = vmatpush3.bf16.msra.mxu0 %v693_v13 }
  0x48   :  { %641 = vmatpush3.bf16.msra.mxu1 %v694_v14  ;;  %622 = vmatprep.subr.bf16.mxu0 %v872_v5 }
  0x49   :  { %642 = vmatprep.subr.bf16.mxu1 %v872_v5 }
  0x4b   :  { %623 = vmatpush3.bf16.msra.mxu0 %v695_v15 }
  0x4c   :  { %643 = vmatpush3.bf16.msra.mxu1 %v696_v16  ;;  %624 = vmatprep.subr.bf16.mxu0 %v872_v5 }
  0x4d   :  { %644 = vmatprep.subr.bf16.mxu1 %v872_v5 }
  0x4f   :  { %625 = vmatpush3.bf16.msra.mxu0 %v697_v17 }
  0x50   :  { %645 = vmatpush3.bf16.msra.mxu1 %v698_v18  ;;  %626 = vmatprep.subr.bf16.mxu0 %v872_v5 }
  0x51   :  { %646 = vmatprep.subr.bf16.mxu1 %v872_v5 }
  0x53   :  { %627 = vmatpush3.bf16.msra.mxu0 %v699_v19 }
  0x54   :  { %647 = vmatpush3.bf16.msra.mxu1 %v700_v20  ;;  %652 = vmatprep.subr.bf16.mxu0 %v872_v5 }
  0xc1   :  { %v90_v21 = vpop.xlane.xlu0 %89 }
  0xc2   :  { %v93_v22 = vmul.f32 0.03125, %v90_v21 }
  0xc4   :  { %v95_v23 = vadd.f32 1e-05, %v93_v22 }
  0xc5   :  { %v92_v24 = vpop.xlane.xlu0 %91 }
  0xc6   :  { %710 = vrsqrt.f32 %v95_v23  ;;  %v94_v25 = vmul.f32 0.03125, %v92_v24 }
  0xc8   :  { %v96_v26 = vadd.f32 1e-05, %v94_v25 }
  0xca   :  { %712 = vrsqrt.f32 %v96_v26 }
  0xd3   :  { %v711_v27 = vpop.eup %710 }
  0xd4   :  { %v99_v28 = vmul.f32 %v711_v27, %v938_v0 }
  0xd6   :  { %v108_v32 = vmul.f32 %v523_v30, %v99_v28 }
  0xd7   :  { %v713_v29 = vpop.eup %712 }
  0xd8   :  { %v100_v31 = vmul.f32 %v713_v29, %v940_v1 }
  0xda   :  { %v109_v33 = vmul.f32 %v523_v30, %v100_v31 }
  0xdc   :  { %v568_v34 = vpack.c.bf16 %v109_v33, %v108_v32 }
  0xde   :  { %569 = vst [vmem:[#allocation2] sm:$0xff] %v568_v34  }
  0xe5   :  { %v701_v36 = vld [vmem:[#allocation2] sm:$0xff]  }
  0xe6   :  { %629 = vmatmul.mubr.bf16.vlgmr.msra.gmra.mxu0 %v701_v36  ;;  %649 = vmatmul.mubr.bf16.vlgmr.msra.gmra.mxu1 %v701_v36 }
  0xe7   :  { %653 = vmatpush3.bf16.msra.mxu0 %v702_v35  ;;  %668 = vmatprep.mubr.msk.bf16.mxu0 %vm873_vm0, %v872_v5 }
  0xe8   :  { %654 = vmatprep.subr.bf16.mxu0 %v872_v5 }
  0xeb   :  { %655 = vmatpush3.bf16.msra.mxu0 %v703_v37 }
  0xec   :  { %656 = vmatprep.subr.bf16.mxu0 %v872_v5 }
  0xef   :  { %657 = vmatpush3.bf16.msra.mxu0 %v704_v38 }
  0xf0   :  { %658 = vmatprep.subr.bf16.mxu0 %v872_v5 }
  0xf3   :  { %659 = vmatpush3.bf16.msra.mxu0 %v705_v39 }
  0xf4   :  { %660 = vmatprep.subr.bf16.mxu0 %v872_v5 }
  0xf7   :  { %661 = vmatpush3.bf16.msra.mxu0 %v706_v40 }
  0xf8   :  { %662 = vmatprep.subr.bf16.mxu0 %v872_v5 }
  0xfb   :  { %663 = vmatpush3.bf16.msra.mxu0 %v707_v41 }
  0xfc   :  { %664 = vmatprep.subr.bf16.mxu0 %v872_v5 }
  0xff   :  { %665 = vmatpush3.bf16.msra.mxu0 %v708_v42 }
 0x100   :  { %666 = vmatprep.subr.bf16.mxu0 %v872_v5 }
 0x103   :  { %667 = vmatpush3.bf16.msra.mxu0 %v709_v43 }
 0x106   :  { %669 = vmatmul.mubr.bf16.vlgmr.msra.gmra.mxu0 %v701_v36 }
 0x1a6   :  { %v226_v44 = vpop.f32.mrf.mxu0  ;;  %v341_v45 = vpop.f32.mrf.mxu1 }
 0x1a8   :  { %v630_v46 = vpop.f32.mrf.mxu0  ;;  %v650_v47 = vpop.f32.mrf.mxu1 }
 0x1aa   :  { %v229_v48 = vpop.f32.mrf.mxu0  ;;  %v344_v49 = vpop.f32.mrf.mxu1 }
 0x1ab   :  { %v573_v50 = vpack.c.bf16 %v229_v48, %v226_v44  ;;  %v578_v51 = vpack.c.bf16 %v344_v49, %v341_v45 }
 0x1ac   :  { %v631_v52 = vpop.f32.mrf.mxu0  ;;  %v651_v53 = vpop.f32.mrf.mxu1 }
 0x1ad   :  { %574 = vst [vmem:[#allocation11] sm:$0xff] %v573_v50   ;;  %579 = vst [vmem:[#allocation12] sm:$0xff] %v578_v51  }
 0x1ae   :  { %805 = shalt.err (!%p802_p10)
}
 0x1af   :  { %496 = dma.vmem_to_hbm [thread:$0]  %s491_s23, 128, %s1005_s6, [#allocation13], %s865_s27, %s865_s27, %s866_s28  }
 0x1b0   :  { %s814_s8 = scalar_lea.vmem %s479_s25, 128  ;;  %p819_p12 = scmp.lt.s32.totalorder %s479_s25, %s479_s25 }
 0x1b1   :  { %p815_p11 = scmp.ne.s32.totalorder %s479_s25, %s814_s8  ;;  %p820_p13 = scmp.lt.s32.totalorder %s814_s8, %s814_s8 }
 0x1b3   :  { %p821_p0 = por %p820_p13, %p819_p12 }
 0x1b5   :  { %p822_p1 = pnand %p821_p0, %p815_p11 }
 0x1b7   :  { %825 = shalt.err (!%p822_p1)
}
 0x1b8   :  { %484 = dma.vmem_to_hbm [thread:$0]  %s479_s25, 128, %s1004_s5, [#allocation5], %s865_s27, %s865_s27, %s866_s28  }
 0x1b9   :  { %s876_s11 = smov [#allocation14]  }
 0x1ba   :  { %s502_s12 = sshll.u32 %s876_s11, 4  ;;  %s503_s12 = int_to_ptr.vmem [resolvable:$true] %s502_s12 }
 0x1bb   :  { %s834_s6 = scalar_lea.vmem %s503_s12, 128  ;;  %p839_p3 = scmp.lt.s32.totalorder %s503_s12, %s503_s12 }
 0x1bc   :  { %p835_p2 = scmp.ne.s32.totalorder %s503_s12, %s834_s6  ;;  %p840_p4 = scmp.lt.s32.totalorder %s834_s6, %s834_s6 }
 0x1be   :  { %p841_p5 = por %p840_p4, %p839_p3 }
 0x1c0   :  { %p842_p6 = pnand %p841_p5, %p835_p2 }
 0x1c6   :  { %v456_v54 = vpop.f32.mrf.mxu0 }
 0x1c8   :  { %v670_v55 = vpop.f32.mrf.mxu0 }
 0x1ca   :  { %v459_v56 = vpop.f32.mrf.mxu0 }
 0x1cb   :  { %v583_v57 = vpack.c.bf16 %v459_v56, %v456_v54 }
 0x1cc   :  { %v671_v58 = vpop.f32.mrf.mxu0 }
 0x1cd   :  { %584 = vst [vmem:[#allocation14] sm:$0xff] %v583_v57  }
 0x1ce   :  { %845 = shalt.err (!%p842_p6)
}
 0x1cf   :  { %508 = dma.vmem_to_hbm [thread:$0]  %s503_s12, 128, %s1006_s7, [#allocation13], %s865_s27, %s865_s27, %s866_s28  }
 0x1d0   :  { %860 = dma.done.wait [#allocation5], 128  }
 0x1d1   :  { %861 = vsyncadd [#allocation5], 4294967168 }
 0x1d2   :  { %862 = dma.done.wait [#allocation13], 256  }
 0x1d3   :  { %863 = vsyncadd [#allocation13], 4294967040 }
 0x1d4   :  { %518 = vsyncpa [#allocation4], 1 }
 0x1d5   :  { %519 = vsyncpa [#allocation7], 1 }
 0x1d6   :  { %520 = vsyncpa [#allocation10], 1 }
 0x1d7   :  { %521 = vsyncpa [#allocation5], 1 }
 0x1d8   :  { %522 = vsyncpa [#allocation13], 1 }

</bundles_post_ra>
